<compile_context>
chip_gen: v6e
topology: v6e:2x2x1
jax: 0.10.0
libtpu: 0.0.40
codegen_flags: <defaults>
</compile_context>

<pallas_src>
import math

import jax
import jax.numpy as jnp
from jax.experimental import pallas as pl
from jax.experimental.pallas import tpu as pltpu


def _ceil_to(x: int, m: int) -> int:
    return ((x + m - 1) // m) * m


def _pick_vocab_tile(v_pad: int, hidden_dim: int,
                     budget_bytes: int = 8 << 20) -> int:
    """Largest 128-multiple tile TN dividing v_pad whose double-buffered bf16
    weight tile (2 * H * TN * 2B) stays within `budget_bytes`."""
    max_tn = max(128, ((budget_bytes // (2 * hidden_dim * 2)) // 128) * 128)
    if v_pad <= max_tn:
        return v_pad                      # single full-width block (grid of 1)
    best = 128
    t = 256
    while t <= max_tn:
        if v_pad % t == 0:
            best = t
        t += 128
    return best


def _vmem_limit(resident_bytes: int, streamed_bytes: int) -> int:
    # Streamed blocks are double-buffered by the pipeline; count that factor
    # exactly once, add small slack, clamp so it also fits v7x (64 MiB VMEM).
    est = resident_bytes + 2 * streamed_bytes + (2 << 20)
    return int(min(max(est, 16 << 20), 48 << 20))


# ----------------------------------------------------------------------------
# Fused kernel: GRU stack (step 0) + vocab-tiled projection + log_softmax
# ----------------------------------------------------------------------------
def _make_decoder_kernel(n_layers: int, hidden_dim: int, layer_rows,
                         vocab_tile: int):
    """layer_rows[l] = (row_start, in_rows) of layer l's w_ih block inside the
    packed weight slab; the layer's w_hh block ([H,3H]) follows immediately."""
    H = hidden_dim
    TN = vocab_tile

    def kernel(dec_inp_ref, hidden_ref, w_slab_ref, b_slab_ref,
               w_out_ref, b_out_ref,           # streamed per vocab tile
               logp_ref, h_out_ref,            # outputs (resident blocks)
               x_top_ref, logits_ref):         # VMEM scratch
        j = pl.program_id(0)
        nv = pl.num_programs(0)

        # ---- GRU stack (all layers, one time step) — grid step 0 only ------
        @pl.when(j == 0)
        def _gru():
            x = dec_inp_ref[...]                                # [B, in0_pad] f32
            for l in range(n_layers):
                row, in_rows = layer_rows[l]
                w_ih = w_slab_ref[row:row + in_rows, :]                # bf16 [in,3H]
                w_hh = w_slab_ref[row + in_rows:row + in_rows + H, :]  # bf16 [H,3H]
                b_ih = b_slab_ref[2 * l:2 * l + 1, :]                  # f32 [1,3H]
                b_hh = b_slab_ref[2 * l + 1:2 * l + 2, :]              # f32 [1,3H]
                h_prev = hidden_ref[l]                                 # [B,H] f32

                gi = jnp.dot(x.astype(jnp.bfloat16), w_ih,
                             preferred_element_type=jnp.float32) + b_ih
                gh = jnp.dot(h_prev.astype(jnp.bfloat16), w_hh,
                             preferred_element_type=jnp.float32) + b_hh
                r = jax.nn.sigmoid(gi[:, :H] + gh[:, :H])
                z = jax.nn.sigmoid(gi[:, H:2 * H] + gh[:, H:2 * H])
                n = jnp.tanh(gi[:, 2 * H:] + r * gh[:, 2 * H:])
                h_new = (1.0 - z) * n + z * h_prev
                h_out_ref[l] = h_new
                x = h_new
            x_top_ref[...] = x.astype(jnp.bfloat16)

        # ---- output projection for vocab tile j (every grid step) ----------
        tile = (jnp.dot(x_top_ref[...], w_out_ref[...],
                        preferred_element_type=jnp.float32) + b_out_ref[...])
        off = pl.multiple_of(j * TN, TN)
        logits_ref[:, pl.ds(off, TN)] = tile

        # ---- in-kernel log_softmax over the (padded) vocab, last step ------
        @pl.when(j == nv - 1)
        def _log_softmax():
            logits = logits_ref[...]                            # [B, V_pad] f32
            m = jnp.max(logits, axis=-1, keepdims=True)
            lse = m + jnp.log(jnp.sum(jnp.exp(logits - m), axis=-1,
                                      keepdims=True))
            logp_ref[...] = logits - lse

    return kernel


# ----------------------------------------------------------------------------
# Decoder module (JAX / Pallas)
# ----------------------------------------------------------------------------
class PallasDecoder:
    def __init__(self, vocab_size, embed_dim, style_embed_dim, hidden_dim,
                 num_styles, n_layers, max_seq_length, key,
                 pretrained_weights=None, bidirectional=False):
        # TODO(synk): bidirectional=True branch of the PyTorch module not implemented.
        assert not bidirectional
        assert hidden_dim % 8 == 0, "hidden_dim must be a sublane multiple"
        self.vocab_size = vocab_size
        self.embed_dim = embed_dim
        self.style_embed_dim = style_embed_dim
        self.hidden_dim = hidden_dim
        self.num_styles = num_styles
        self.n_layers = n_layers
        self.max_seq_length = max_seq_length

        H = hidden_dim
        H3 = 3 * H
        self.gru_in = embed_dim + style_embed_dim + hidden_dim
        self.in0_pad = _ceil_to(self.gru_in, 8)
        self.v_pad = _ceil_to(vocab_size, 128)
        self.vocab_tile = _pick_vocab_tile(self.v_pad, H)

        keys = jax.random.split(key, 4 + 4 * n_layers)
        ki = iter(keys)
        stdv = 1.0 / math.sqrt(hidden_dim)

        # Embedding tables (nn.Embedding -> N(0,1)); kept f32 (tiny gathers).
        self.text_emb = jax.random.normal(next(ki), (vocab_size, embed_dim),
                                          jnp.float32)
        if pretrained_weights is not None:
            self.text_emb = jnp.asarray(pretrained_weights, jnp.float32)
        self.style_emb = jax.random.normal(next(ki),
                                           (num_styles, style_embed_dim),
                                           jnp.float32)

        # ---- GRU params: f32 masters (reference) + packed kernel slabs -----
        self.gru_master = []
        w_blocks, b_rows, layer_rows = [], [], []
        row = 0
        for l in range(n_layers):
            in_l = self.gru_in if l == 0 else H
            in_rows = self.in0_pad if l == 0 else H
            w_ih = jax.random.uniform(next(ki), (in_l, H3), jnp.float32,
                                      -stdv, stdv)
            w_hh = jax.random.uniform(next(ki), (H, H3), jnp.float32,
                                      -stdv, stdv)
            b_ih = jax.random.uniform(next(ki), (1, H3), jnp.float32,
                                      -stdv, stdv)
            b_hh = jax.random.uniform(next(ki), (1, H3), jnp.float32,
                                      -stdv, stdv)
            self.gru_master.append((w_ih, w_hh, b_ih, b_hh))

            w_ih_p = w_ih
            if in_rows != in_l:    # zero-pad rows to a sublane multiple
                w_ih_p = jnp.zeros((in_rows, H3), jnp.float32).at[:in_l].set(w_ih)
            w_blocks += [w_ih_p.astype(jnp.bfloat16), w_hh.astype(jnp.bfloat16)]
            b_rows += [b_ih, b_hh]
            layer_rows.append((row, in_rows))
            row += in_rows + H
        self.w_slab = jnp.concatenate(w_blocks, axis=0)        # [R, 3H] bf16
        self.b_slab = jnp.concatenate(b_rows, axis=0)          # [2L, 3H] f32
        self.layer_rows = tuple(layer_rows)

        # ---- Output projection (padded to a 128-multiple vocab) ------------
        out_stdv = 1.0 / math.sqrt(hidden_dim)
        self.w_out = jax.random.uniform(next(ki), (H, vocab_size), jnp.float32,
                                        -out_stdv, out_stdv)
        self.b_out = jax.random.uniform(next(ki), (1, vocab_size), jnp.float32,
                                        -out_stdv, out_stdv)
        if self.v_pad != vocab_size:
            w_out_p = jnp.zeros((H, self.v_pad), jnp.float32
                                ).at[:, :vocab_size].set(self.w_out)
            # padded logits pinned to -1e30 so they vanish from the softmax
            b_out_p = jnp.full((1, self.v_pad), -1e30, jnp.float32
                               ).at[:, :vocab_size].set(self.b_out)
        else:
            w_out_p, b_out_p = self.w_out, self.b_out
        # TODO(synk): optional fp8 (v7x) / int8 (v5e, v6e) w_out weight path.
        self.w_out_bf16 = w_out_p.astype(jnp.bfloat16)
        self.b_out_pad = b_out_p

        self._forward_jit = jax.jit(self._forward_impl)

    # ------------------------------------------------------------------
    def _forward_impl(self, input_sequences, hidden, sequences_styles):
        B = input_sequences.shape[1]
        H, V, V_pad, TN = (self.hidden_dim, self.vocab_size, self.v_pad,
                           self.vocab_tile)
        L = self.n_layers

        # Glue (one small fused XLA program under jit): gathers + concat.
        # TODO(synk): could fold the gather into the kernel via scalar-prefetched ids.
        last_h = hidden[-1]                                               # [B, H]
        text_e = jnp.take(self.text_emb, input_sequences[0], axis=0)      # [B, E]
        style_e = jnp.take(self.style_emb, sequences_styles[0], axis=0)   # [B, S]
        dec_inp = jnp.concatenate([text_e, style_e, last_h], axis=-1)     # [B, E+S+H]
        if self.in0_pad != self.gru_in:
            dec_inp = jnp.pad(dec_inp,
                              ((0, 0), (0, self.in0_pad - self.gru_in)))

        resident = (dec_inp.size * 4 + 2 * hidden.size * 4
                    + self.w_slab.size * 2 + self.b_slab.size * 4
                    + B * V_pad * 4                    # logp output block
                    + B * H * 2 + B * V_pad * 4)       # scratches
        streamed = H * TN * 2 + TN * 4                 # w_out (bf16) + b_out (f32) tile

        kernel = _make_decoder_kernel(L, H, self.layer_rows, TN)
        logp_pad, new_hidden = pl.pallas_call(
            kernel,
            out_shape=(jax.ShapeDtypeStruct((B, V_pad), jnp.float32),
                       jax.ShapeDtypeStruct((L, B, H), jnp.float32)),
            grid=(V_pad // TN,),
            in_specs=[
                pl.BlockSpec((B, self.in0_pad), lambda j: (0, 0)),
                pl.BlockSpec((L, B, H), lambda j: (0, 0, 0)),
                pl.BlockSpec(self.w_slab.shape, lambda j: (0, 0)),
                pl.BlockSpec(self.b_slab.shape, lambda j: (0, 0)),
                pl.BlockSpec((H, TN), lambda j: (0, j)),
                pl.BlockSpec((1, TN), lambda j: (0, j)),
            ],
            out_specs=(
                pl.BlockSpec((B, V_pad), lambda j: (0, 0)),
                pl.BlockSpec((L, B, H), lambda j: (0, 0, 0)),
            ),
            scratch_shapes=[
                pltpu.VMEM((B, H), jnp.bfloat16),      # top-layer hidden (bf16)
                pltpu.VMEM((B, V_pad), jnp.float32),   # resident logits
            ],
            input_output_aliases={1: 1},               # hidden -> new hidden
            compiler_params=pltpu.CompilerParams(
                dimension_semantics=("arbitrary",),
                vmem_limit_bytes=_vmem_limit(resident, streamed)),
        )(dec_inp, hidden, self.w_slab, self.b_slab,
          self.w_out_bf16, self.b_out_pad)

        logp = logp_pad[:, :V] if V_pad != V else logp_pad
        return logp, new_hidden

    # ------------------------------------------------------------------
    def forward(self, input_sequences, hidden, sequences_lengths,
                sequences_styles, encoder_outputs):
        """Mirrors Decoder.forward (bidirectional=False, decode-step length 1).
        encoder_outputs is transposed-then-unused in the PyTorch module and
        sequences_lengths is never used, so both are dropped."""
        del sequences_lengths, encoder_outputs
        return self._forward_jit(input_sequences, hidden, sequences_styles)

    # ------------------------------------------------------------------
    def forward_reference(self, input_sequences, hidden, sequences_lengths,
                          sequences_styles, encoder_outputs):
        """Pure-JAX oracle.  Uses the same bf16-quantized weights as the
        kernel (so the allclose check documents the bf16-weight tolerance,
        it is not a full-f32 oracle)."""
        del sequences_lengths, encoder_outputs
        H = self.hidden_dim
        last_h = hidden[-1]
        text_e = jnp.take(self.text_emb, input_sequences[0], axis=0)
        style_e = jnp.take(self.style_emb, sequences_styles[0], axis=0)
        x = jnp.concatenate([text_e, style_e, last_h], axis=-1)

        new_h = []
        for l in range(self.n_layers):
            w_ih, w_hh, b_ih, b_hh = self.gru_master[l]
            gi = jnp.dot(x.astype(jnp.bfloat16), w_ih.astype(jnp.bfloat16),
                         preferred_element_type=jnp.float32) + b_ih
            gh = jnp.dot(hidden[l].astype(jnp.bfloat16),
                         w_hh.astype(jnp.bfloat16),
                         preferred_element_type=jnp.float32) + b_hh
            r = jax.nn.sigmoid(gi[:, :H] + gh[:, :H])
            z = jax.nn.sigmoid(gi[:, H:2 * H] + gh[:, H:2 * H])
            n = jnp.tanh(gi[:, 2 * H:] + r * gh[:, 2 * H:])
            h_new = (1.0 - z) * n + z * hidden[l]
            new_h.append(h_new)
            x = h_new

        logits = jnp.dot(x.astype(jnp.bfloat16),
                         self.w_out.astype(jnp.bfloat16),
                         preferred_element_type=jnp.float32) + self.b_out
        logp = jax.nn.log_softmax(logits, axis=1)
        return logp, jnp.stack(new_h, axis=0)


# ----------------------------------------------------------------------------
if __name__ == "__main__":
    # Small but lane-aligned demo shapes (H, V multiples of 128; B >= 8).
    vocab_size = 512
    embed_dim = 64
    style_embed_dim = 64
    hidden_dim = 128
    num_styles = 4
    n_layers = 2
    max_seq_length = 8
    batch = 8
    enc_seq = 8

    root = jax.random.PRNGKey(0)
    k_params, k_tok, k_sty, k_hid, k_enc = jax.random.split(root, 5)

    dec = PallasDecoder(vocab_size, embed_dim, style_embed_dim, hidden_dim,
                        num_styles, n_layers, max_seq_length, key=k_params)

    # Decoder input step has seq_len 1 (forced by the module semantics).
    input_sequences = jax.random.randint(k_tok, (1, batch), 0, vocab_size,
                                         dtype=jnp.int32)
    sequences_styles = jax.random.randint(k_sty, (1, batch), 0, num_styles,
                                          dtype=jnp.int32)
    hidden = jax.random.normal(k_hid, (n_layers, batch, hidden_dim),
                               jnp.float32)
    encoder_outputs = jax.random.normal(k_enc, (enc_seq, batch, hidden_dim),
                                        jnp.float32)
    sequences_lengths = jnp.full((batch,), enc_seq, dtype=jnp.int32)

    logp, new_hidden = dec.forward(input_sequences, hidden, sequences_lengths,
                                   sequences_styles, encoder_outputs)
    jax.block_until_ready((logp, new_hidden))

    ref_logp, ref_hidden = dec.forward_reference(
        input_sequences, hidden, sequences_lengths, sequences_styles,
        encoder_outputs)

    assert logp.shape == (batch, vocab_size)
    assert new_hidden.shape == (n_layers, batch, hidden_dim)
    # bf16 weight streaming in both kernel and reference -> loosened tolerance.
    assert jnp.allclose(logp, ref_logp, atol=5e-3, rtol=5e-3)
    assert jnp.allclose(new_hidden, ref_hidden, atol=5e-3, rtol=5e-3)

    print("KERNEL_OK")
</pallas_src>

<mosaic_0001>
module attributes {stable_mosaic.version = 11 : i64} {
  func.func @kernel(%arg0: i32, %arg1: memref<8x256xf32, #tpu.memory_space<vmem>>, %arg2: memref<2x8x128xf32, #tpu.memory_space<vmem>>, %arg3: memref<640x384xbf16, #tpu.memory_space<vmem>>, %arg4: memref<4x384xf32, #tpu.memory_space<vmem>>, %arg5: memref<128x512xbf16, #tpu.memory_space<vmem>>, %arg6: memref<1x512xf32, #tpu.memory_space<vmem>>, %arg7: memref<8x512xf32, #tpu.memory_space<vmem>>, %arg8: memref<2x8x128xf32, #tpu.memory_space<vmem>>, %arg9: memref<8x128xbf16, #tpu.memory_space<vmem>>, %arg10: memref<8x512xf32, #tpu.memory_space<vmem>>) attributes {dimension_semantics = [#tpu.dimension_semantics<arbitrary>], iteration_bounds = array<i64: 1>, scalar_prefetch = 0 : i64, scratch_operands = 2 : i64, tpu.core_type = #tpu.core_type<tc>, window_params = [{pipeline_mode = #tpu.pipeline_mode<synchronous>, transform_indices = @transform_0, window_bounds = array<i64: 8, 256>}, {pipeline_mode = #tpu.pipeline_mode<synchronous>, transform_indices = @transform_1, window_bounds = array<i64: 2, 8, 128>}, {pipeline_mode = #tpu.pipeline_mode<synchronous>, transform_indices = @transform_2, window_bounds = array<i64: 640, 384>}, {pipeline_mode = #tpu.pipeline_mode<synchronous>, transform_indices = @transform_3, window_bounds = array<i64: 4, 384>}, {transform_indices = @transform_4, window_bounds = array<i64: 128, 512>}, {transform_indices = @transform_5, window_bounds = array<i64: 1, 512>}, {pipeline_mode = #tpu.pipeline_mode<synchronous>, transform_indices = @transform_6, window_bounds = array<i64: 8, 512>}, {pipeline_mode = #tpu.pipeline_mode<synchronous>, transform_indices = @transform_7, window_bounds = array<i64: 2, 8, 128>}]} {
    %c0_i32 = arith.constant 0 : i32
    %0 = arith.cmpi eq, %arg0, %c0_i32 : i32
    %1 = arith.extui %0 : i1 to i32
    %c0_i32_0 = arith.constant 0 : i32
    %2 = arith.cmpi ne, %1, %c0_i32_0 : i32
    scf.if %2 {
      %c0_9 = arith.constant 0 : index
      %c0_10 = arith.constant 0 : index
      %16 = vector.load %arg1[%c0_9, %c0_10] : memref<8x256xf32, #tpu.memory_space<vmem>>, vector<8x256xf32>
      %c0_11 = arith.constant 0 : index
      %c0_12 = arith.constant 0 : index
      %17 = vector.load %arg3[%c0_11, %c0_12] : memref<640x384xbf16, #tpu.memory_space<vmem>>, vector<256x384xbf16>
      %c256 = arith.constant 256 : index
      %c0_13 = arith.constant 0 : index
      %18 = vector.load %arg3[%c256, %c0_13] : memref<640x384xbf16, #tpu.memory_space<vmem>>, vector<128x384xbf16>
      %c0_14 = arith.constant 0 : index
      %c0_15 = arith.constant 0 : index
      %19 = vector.load %arg4[%c0_14, %c0_15] : memref<4x384xf32, #tpu.memory_space<vmem>>, vector<1x384xf32>
      %c1 = arith.constant 1 : index
      %c0_16 = arith.constant 0 : index
      %20 = vector.load %arg4[%c1, %c0_16] : memref<4x384xf32, #tpu.memory_space<vmem>>, vector<1x384xf32>
      %c0_17 = arith.constant 0 : index
      %c0_18 = arith.constant 0 : index
      %c0_19 = arith.constant 0 : index
      %21 = vector.load %arg2[%c0_17, %c0_18, %c0_19] : memref<2x8x128xf32, #tpu.memory_space<vmem>>, vector<1x8x128xf32>
      %22 = vector.shape_cast %21 : vector<1x8x128xf32> to vector<8x128xf32>
      %23 = arith.truncf %16 : vector<8x256xf32> to vector<8x256xbf16>
      %cst_20 = arith.constant dense<0.000000e+00> : vector<8x384xf32>
      %24 = tpu.matmul %23, %17, %cst_20 {dimension_numbers = #tpu.dot_dimension_numbers<[1], [0], [0], [1], [0, 0, 1, 1], [], []>} : vector<8x256xbf16>, vector<256x384xbf16>, vector<8x384xf32> -> vector<8x384xf32>
      %25 = vector.broadcast %19 : vector<1x384xf32> to vector<8x384xf32>
      %26 = arith.addf %24, %25 : vector<8x384xf32>
      %27 = arith.truncf %22 : vector<8x128xf32> to vector<8x128xbf16>
      %cst_21 = arith.constant dense<0.000000e+00> : vector<8x384xf32>
      %28 = tpu.matmul %27, %18, %cst_21 {dimension_numbers = #tpu.dot_dimension_numbers<[1], [0], [0], [1], [0, 0, 1, 1], [], []>} : vector<8x128xbf16>, vector<128x384xbf16>, vector<8x384xf32> -> vector<8x384xf32>
      %29 = vector.broadcast %20 : vector<1x384xf32> to vector<8x384xf32>
      %30 = arith.addf %28, %29 : vector<8x384xf32>
      %31 = vector.extract_strided_slice %26 {offsets = [0, 0], sizes = [8, 128], strides = [1, 1]} : vector<8x384xf32> to vector<8x128xf32>
      %32 = vector.extract_strided_slice %30 {offsets = [0, 0], sizes = [8, 128], strides = [1, 1]} : vector<8x384xf32> to vector<8x128xf32>
      %33 = arith.addf %31, %32 : vector<8x128xf32>
      %34 = arith.negf %33 : vector<8x128xf32>
      %35 = math.exp %34 : vector<8x128xf32>
      %cst_22 = arith.constant 1.000000e+00 : f32
      %36 = vector.broadcast %cst_22 : f32 to vector<8x128xf32>
      %37 = arith.addf %36, %35 : vector<8x128xf32>
      %38 = arith.divf %36, %37 : vector<8x128xf32>
      %39 = vector.extract_strided_slice %26 {offsets = [0, 128], sizes = [8, 128], strides = [1, 1]} : vector<8x384xf32> to vector<8x128xf32>
      %40 = vector.extract_strided_slice %30 {offsets = [0, 128], sizes = [8, 128], strides = [1, 1]} : vector<8x384xf32> to vector<8x128xf32>
      %41 = arith.addf %39, %40 : vector<8x128xf32>
      %42 = arith.negf %41 : vector<8x128xf32>
      %43 = math.exp %42 : vector<8x128xf32>
      %cst_23 = arith.constant 1.000000e+00 : f32
      %44 = vector.broadcast %cst_23 : f32 to vector<8x128xf32>
      %45 = arith.addf %44, %43 : vector<8x128xf32>
      %46 = arith.divf %44, %45 : vector<8x128xf32>
      %47 = vector.extract_strided_slice %26 {offsets = [0, 256], sizes = [8, 128], strides = [1, 1]} : vector<8x384xf32> to vector<8x128xf32>
      %48 = vector.extract_strided_slice %30 {offsets = [0, 256], sizes = [8, 128], strides = [1, 1]} : vector<8x384xf32> to vector<8x128xf32>
      %49 = arith.mulf %38, %48 : vector<8x128xf32>
      %50 = arith.addf %47, %49 : vector<8x128xf32>
      %51 = math.tanh %50 : vector<8x128xf32>
      %cst_24 = arith.constant 1.000000e+00 : f32
      %52 = vector.broadcast %cst_24 : f32 to vector<8x128xf32>
      %53 = arith.subf %52, %46 : vector<8x128xf32>
      %54 = arith.mulf %53, %51 : vector<8x128xf32>
      %55 = arith.mulf %46, %22 : vector<8x128xf32>
      %56 = arith.addf %54, %55 : vector<8x128xf32>
      %c0_25 = arith.constant 0 : index
      %c0_26 = arith.constant 0 : index
      %c0_27 = arith.constant 0 : index
      %57 = vector.load %arg8[%c0_25, %c0_26, %c0_27] : memref<2x8x128xf32, #tpu.memory_space<vmem>>, vector<1x8x128xf32>
      %58 = vector.shape_cast %57 : vector<1x8x128xf32> to vector<8x128xf32>
      %59 = vector.shape_cast %56 : vector<8x128xf32> to vector<1x8x128xf32>
      tpu.vector_store %arg8[%c0_25, %c0_26, %c0_27], %59 {strides = array<i32>} : memref<2x8x128xf32, #tpu.memory_space<vmem>>, vector<1x8x128xf32>,
      %c384 = arith.constant 384 : index
      %c0_28 = arith.constant 0 : index
      %60 = vector.load %arg3[%c384, %c0_28] : memref<640x384xbf16, #tpu.memory_space<vmem>>, vector<128x384xbf16>
      %c512 = arith.constant 512 : index
      %c0_29 = arith.constant 0 : index
      %61 = vector.load %arg3[%c512, %c0_29] : memref<640x384xbf16, #tpu.memory_space<vmem>>, vector<128x384xbf16>
      %c2 = arith.constant 2 : index
      %c0_30 = arith.constant 0 : index
      %62 = vector.load %arg4[%c2, %c0_30] : memref<4x384xf32, #tpu.memory_space<vmem>>, vector<1x384xf32>
      %c3 = arith.constant 3 : index
      %c0_31 = arith.constant 0 : index
      %63 = vector.load %arg4[%c3, %c0_31] : memref<4x384xf32, #tpu.memory_space<vmem>>, vector<1x384xf32>
      %c1_32 = arith.constant 1 : index
      %c0_33 = arith.constant 0 : index
      %c0_34 = arith.constant 0 : index
      %64 = vector.load %arg2[%c1_32, %c0_33, %c0_34] : memref<2x8x128xf32, #tpu.memory_space<vmem>>, vector<1x8x128xf32>
      %65 = vector.shape_cast %64 : vector<1x8x128xf32> to vector<8x128xf32>
      %66 = arith.truncf %56 : vector<8x128xf32> to vector<8x128xbf16>
      %cst_35 = arith.constant dense<0.000000e+00> : vector<8x384xf32>
      %67 = tpu.matmul %66, %60, %cst_35 {dimension_numbers = #tpu.dot_dimension_numbers<[1], [0], [0], [1], [0, 0, 1, 1], [], []>} : vector<8x128xbf16>, vector<128x384xbf16>, vector<8x384xf32> -> vector<8x384xf32>
      %68 = vector.broadcast %62 : vector<1x384xf32> to vector<8x384xf32>
      %69 = arith.addf %67, %68 : vector<8x384xf32>
      %70 = arith.truncf %65 : vector<8x128xf32> to vector<8x128xbf16>
      %cst_36 = arith.constant dense<0.000000e+00> : vector<8x384xf32>
      %71 = tpu.matmul %70, %61, %cst_36 {dimension_numbers = #tpu.dot_dimension_numbers<[1], [0], [0], [1], [0, 0, 1, 1], [], []>} : vector<8x128xbf16>, vector<128x384xbf16>, vector<8x384xf32> -> vector<8x384xf32>
      %72 = vector.broadcast %63 : vector<1x384xf32> to vector<8x384xf32>
      %73 = arith.addf %71, %72 : vector<8x384xf32>
      %74 = vector.extract_strided_slice %69 {offsets = [0, 0], sizes = [8, 128], strides = [1, 1]} : vector<8x384xf32> to vector<8x128xf32>
      %75 = vector.extract_strided_slice %73 {offsets = [0, 0], sizes = [8, 128], strides = [1, 1]} : vector<8x384xf32> to vector<8x128xf32>
      %76 = arith.addf %74, %75 : vector<8x128xf32>
      %77 = arith.negf %76 : vector<8x128xf32>
      %78 = math.exp %77 : vector<8x128xf32>
      %cst_37 = arith.constant 1.000000e+00 : f32
      %79 = vector.broadcast %cst_37 : f32 to vector<8x128xf32>
      %80 = arith.addf %79, %78 : vector<8x128xf32>
      %81 = arith.divf %79, %80 : vector<8x128xf32>
      %82 = vector.extract_strided_slice %69 {offsets = [0, 128], sizes = [8, 128], strides = [1, 1]} : vector<8x384xf32> to vector<8x128xf32>
      %83 = vector.extract_strided_slice %73 {offsets = [0, 128], sizes = [8, 128], strides = [1, 1]} : vector<8x384xf32> to vector<8x128xf32>
      %84 = arith.addf %82, %83 : vector<8x128xf32>
      %85 = arith.negf %84 : vector<8x128xf32>
      %86 = math.exp %85 : vector<8x128xf32>
      %cst_38 = arith.constant 1.000000e+00 : f32
      %87 = vector.broadcast %cst_38 : f32 to vector<8x128xf32>
      %88 = arith.addf %87, %86 : vector<8x128xf32>
      %89 = arith.divf %87, %88 : vector<8x128xf32>
      %90 = vector.extract_strided_slice %69 {offsets = [0, 256], sizes = [8, 128], strides = [1, 1]} : vector<8x384xf32> to vector<8x128xf32>
      %91 = vector.extract_strided_slice %73 {offsets = [0, 256], sizes = [8, 128], strides = [1, 1]} : vector<8x384xf32> to vector<8x128xf32>
      %92 = arith.mulf %81, %91 : vector<8x128xf32>
      %93 = arith.addf %90, %92 : vector<8x128xf32>
      %94 = math.tanh %93 : vector<8x128xf32>
      %cst_39 = arith.constant 1.000000e+00 : f32
      %95 = vector.broadcast %cst_39 : f32 to vector<8x128xf32>
      %96 = arith.subf %95, %89 : vector<8x128xf32>
      %97 = arith.mulf %96, %94 : vector<8x128xf32>
      %98 = arith.mulf %89, %65 : vector<8x128xf32>
      %99 = arith.addf %97, %98 : vector<8x128xf32>
      %c1_40 = arith.constant 1 : index
      %c0_41 = arith.constant 0 : index
      %c0_42 = arith.constant 0 : index
      %100 = vector.load %arg8[%c1_40, %c0_41, %c0_42] : memref<2x8x128xf32, #tpu.memory_space<vmem>>, vector<1x8x128xf32>
      %101 = vector.shape_cast %100 : vector<1x8x128xf32> to vector<8x128xf32>
      %102 = vector.shape_cast %99 : vector<8x128xf32> to vector<1x8x128xf32>
      tpu.vector_store %arg8[%c1_40, %c0_41, %c0_42], %102 {strides = array<i32>} : memref<2x8x128xf32, #tpu.memory_space<vmem>>, vector<1x8x128xf32>,
      %103 = arith.truncf %99 : vector<8x128xf32> to vector<8x128xbf16>
      %c0_43 = arith.constant 0 : index
      %c0_44 = arith.constant 0 : index
      %104 = vector.load %arg9[%c0_43, %c0_44] : memref<8x128xbf16, #tpu.memory_space<vmem>>, vector<8x128xbf16>
      tpu.vector_store %arg9[%c0_43, %c0_44], %103 {strides = array<i32>} : memref<8x128xbf16, #tpu.memory_space<vmem>>, vector<8x128xbf16>,
    } else {
    }
    %c0 = arith.constant 0 : index
    %c0_1 = arith.constant 0 : index
    %3 = vector.load %arg9[%c0, %c0_1] : memref<8x128xbf16, #tpu.memory_space<vmem>>, vector<8x128xbf16>
    %c0_2 = arith.constant 0 : index
    %c0_3 = arith.constant 0 : index
    %4 = vector.load %arg5[%c0_2, %c0_3] : memref<128x512xbf16, #tpu.memory_space<vmem>>, vector<128x512xbf16>
    %cst = arith.constant dense<0.000000e+00> : vector<8x512xf32>
    %5 = tpu.matmul %3, %4, %cst {dimension_numbers = #tpu.dot_dimension_numbers<[1], [0], [0], [1], [0, 0, 1, 1], [], []>} : vector<8x128xbf16>, vector<128x512xbf16>, vector<8x512xf32> -> vector<8x512xf32>
    %c0_4 = arith.constant 0 : index
    %c0_5 = arith.constant 0 : index
    %6 = vector.load %arg6[%c0_4, %c0_5] : memref<1x512xf32, #tpu.memory_space<vmem>>, vector<1x512xf32>
    %7 = vector.broadcast %6 : vector<1x512xf32> to vector<8x512xf32>
    %8 = arith.addf %5, %7 : vector<8x512xf32>
    %c512_i32 = arith.constant 512 : i32
    %9 = arith.muli %arg0, %c512_i32 : i32
    %10 = tpu.assume_multiple %9, 512 : i32
    %c0_6 = arith.constant 0 : index
    %11 = arith.index_cast %10 : i32 to index
    %12 = vector.load %arg10[%c0_6, %11] : memref<8x512xf32, #tpu.memory_space<vmem>>, vector<8x512xf32>
    tpu.vector_store %arg10[%c0_6, %11], %8 {strides = array<i32>} : memref<8x512xf32, #tpu.memory_space<vmem>>, vector<8x512xf32>,
    %c0_i32_7 = arith.constant 0 : i32
    %13 = arith.cmpi eq, %arg0, %c0_i32_7 : i32
    %14 = arith.extui %13 : i1 to i32
    %c0_i32_8 = arith.constant 0 : i32
    %15 = arith.cmpi ne, %14, %c0_i32_8 : i32
    scf.if %15 {
      %c0_9 = arith.constant 0 : index
      %c0_10 = arith.constant 0 : index
      %16 = vector.load %arg10[%c0_9, %c0_10] : memref<8x512xf32, #tpu.memory_space<vmem>>, vector<8x512xf32>
      %cst_11 = arith.constant dense<0xFF800000> : vector<8xf32>
      %17 = vector.multi_reduction <maximumf>, %16, %cst_11 [1] : vector<8x512xf32> to vector<8xf32>
      %18 = vector.shape_cast %17 : vector<8xf32> to vector<8x1xf32>
      %19 = vector.broadcast %18 : vector<8x1xf32> to vector<8x512xf32>
      %20 = arith.subf %16, %19 : vector<8x512xf32>
      %21 = math.exp %20 : vector<8x512xf32>
      %cst_12 = arith.constant dense<0.000000e+00> : vector<8xf32>
      %22 = vector.multi_reduction <add>, %21, %cst_12 [1] : vector<8x512xf32> to vector<8xf32>
      %23 = vector.shape_cast %22 : vector<8xf32> to vector<8x1xf32>
      %24 = math.log %23 : vector<8x1xf32>
      %25 = arith.addf %18, %24 : vector<8x1xf32>
      %26 = vector.broadcast %25 : vector<8x1xf32> to vector<8x512xf32>
      %27 = arith.subf %16, %26 : vector<8x512xf32>
      %c0_13 = arith.constant 0 : index
      %c0_14 = arith.constant 0 : index
      %28 = vector.load %arg7[%c0_13, %c0_14] : memref<8x512xf32, #tpu.memory_space<vmem>>, vector<8x512xf32>
      tpu.vector_store %arg7[%c0_13, %c0_14], %27 {strides = array<i32>} : memref<8x512xf32, #tpu.memory_space<vmem>>, vector<8x512xf32>,
    } else {
    }
    return
  }
  func.func @transform_0(%arg0: i32) -> (i32, i32) {
    %c0_i32 = arith.constant 0 : i32
    %c0_i32_0 = arith.constant 0 : i32
    %c0_i32_1 = arith.constant 0 : i32
    return %c0_i32, %c0_i32_0 : i32, i32
  }
  func.func @transform_1(%arg0: i32) -> (i32, i32, i32) {
    %c0_i32 = arith.constant 0 : i32
    %c0_i32_0 = arith.constant 0 : i32
    %c0_i32_1 = arith.constant 0 : i32
    %c0_i32_2 = arith.constant 0 : i32
    return %c0_i32, %c0_i32_0, %c0_i32_1 : i32, i32, i32
  }
  func.func @transform_2(%arg0: i32) -> (i32, i32) {
    %c0_i32 = arith.constant 0 : i32
    %c0_i32_0 = arith.constant 0 : i32
    %c0_i32_1 = arith.constant 0 : i32
    return %c0_i32, %c0_i32_0 : i32, i32
  }
  func.func @transform_3(%arg0: i32) -> (i32, i32) {
    %c0_i32 = arith.constant 0 : i32
    %c0_i32_0 = arith.constant 0 : i32
    %c0_i32_1 = arith.constant 0 : i32
    return %c0_i32, %c0_i32_0 : i32, i32
  }
  func.func @transform_4(%arg0: i32) -> (i32, i32) {
    %c0_i32 = arith.constant 0 : i32
    %c0_i32_0 = arith.constant 0 : i32
    return %c0_i32, %arg0 : i32, i32
  }
  func.func @transform_5(%arg0: i32) -> (i32, i32) {
    %c0_i32 = arith.constant 0 : i32
    %c0_i32_0 = arith.constant 0 : i32
    return %c0_i32, %arg0 : i32, i32
  }
  func.func @transform_6(%arg0: i32) -> (i32, i32) {
    %c0_i32 = arith.constant 0 : i32
    %c0_i32_0 = arith.constant 0 : i32
    %c0_i32_1 = arith.constant 0 : i32
    return %c0_i32, %c0_i32_0 : i32, i32
  }
  func.func @transform_7(%arg0: i32) -> (i32, i32, i32) {
    %c0_i32 = arith.constant 0 : i32
    %c0_i32_0 = arith.constant 0 : i32
    %c0_i32_1 = arith.constant 0 : i32
    %c0_i32_2 = arith.constant 0 : i32
    return %c0_i32, %c0_i32_0, %c0_i32_1 : i32, i32, i32
  }
}

</mosaic_0001>

<bundles_post_ra>
// kernel: _forward_impl.1
= control target key start
LH: loop header
LB: loop body
LE: loop exit
PB: predicated region body
PF: predicated region fallthrough
CT: control target
= control target key end

     0   :  { %13 = vsyncpa [#allocation5], 0  ;;  %s2505_s0 = inlined_call_operand.vmem [shape: f32[8,256], index: 0, kind: input, shape index: {}]   ;;  %s2506_s1 = inlined_call_operand.hbm [shape: f32[2,8,128], index: 1, kind: input, shape index: {}, may-alias: {1,7}]   ;;  %s2507_s2 = inlined_call_operand.hbm [shape: bf16[640,384], index: 2, kind: input, shape index: {}]   ;;  %s2508_s3 = inlined_call_operand.vmem [shape: f32[4,384], index: 3, kind: input, shape index: {}]   ;;  %s2509_s4 = inlined_call_operand.hbm [shape: bf16[128,512], index: 4, kind: input, shape index: {}]   ;;  %s2510_s5 = inlined_call_operand.vmem [shape: f32[1,512], index: 5, kind: input, shape index: {}]   ;;  %s2511_s6 = inlined_call_operand.hbm [shape: f32[8,512], index: 6, kind: output, shape index: {0}]   ;;  %s2512_s7 = inlined_call_operand.hbm [shape: f32[2,8,128], index: 7, kind: output, shape index: {1}, may-alias: {1,7}]  }
   0x1   :  { %14 = vsyncpa [#allocation8], 0 }
   0x2   :  { %15 = vsyncpa [#allocation6], 0 }
   0x3   :  { %16 = vsyncpa [#allocation12], 0  ;;  %s2333_s24 = smov [#allocation7]  }
   0x4   :  { %s36_s25 = sshll.u32 %s2333_s24, 4  ;;  %s37_s25 = int_to_ptr.vmem [resolvable:$true] %s36_s25 }
   0x5   :  { %s2233_s26 = scalar_lea.vmem %s37_s25, 15360  ;;  %p2238_p1 = scmp.lt.s32.totalorder %s37_s25, %s37_s25 }
   0x6   :  { %p2234_p0 = scmp.ne.s32.totalorder %s37_s25, %s2233_s26  ;;  %p2239_p2 = scmp.lt.s32.totalorder %s2233_s26, %s2233_s26 }
   0x8   :  { %p2240_p3 = por %p2239_p2, %p2238_p1 }
   0xa   :  { %p2241_p4 = pnand %p2240_p3, %p2234_p0 }
   0xc   :  { %2244 = shalt.err (!%p2241_p4)
}
   0xd   :  { %s2334_s27 = smov 192   ;;  %s2335_s28 = smov 12  }
   0xe   :  { %42 = dma.hbm_to_vmem [thread:$0]  %s2507_s2, 15360, %s37_s25, [#allocation8], %s2334_s27, %s2334_s27, %s2335_s28  }
   0xf   :  { %s2336_s8 = smov [#allocation4]  }
  0x10   :  { %s24_s9 = sshll.u32 %s2336_s8, 4  ;;  %s25_s9 = int_to_ptr.vmem [resolvable:$true] %s24_s9 }
  0x11   :  { %s2253_s10 = scalar_lea.vmem %s25_s9, 256  ;;  %p2258_p6 = scmp.lt.s32.totalorder %s25_s9, %s25_s9 }
  0x12   :  { %p2254_p5 = scmp.ne.s32.totalorder %s25_s9, %s2253_s10  ;;  %p2259_p7 = scmp.lt.s32.totalorder %s2253_s10, %s2253_s10 }
  0x14   :  { %p2260_p8 = por %p2259_p7, %p2258_p6 }
  0x16   :  { %p2261_p9 = pnand %p2260_p8, %p2254_p5 }
  0x18   :  { %2264 = shalt.err (!%p2261_p9)
}
  0x19   :  { %s2337_s11 = smov 128   ;;  %s2338_s12 = smov 8  }
  0x1a   :  { %30 = dma.hbm_to_vmem [thread:$0]  %s2506_s1, 256, %s25_s9, [#allocation5], %s2337_s11, %s2337_s11, %s2338_s12  }
  0x1b   :  { %s2339_s2 = smov [#allocation9]  }
  0x1c   :  { %s50_s15 = sshll.u32 %s2339_s2, 4  ;;  %s51_s15 = int_to_ptr.vmem [resolvable:$true] %s50_s15 }
  0x1d   :  { %s2273_s16 = scalar_lea.vmem %s51_s15, 4096  ;;  %p2278_p11 = scmp.lt.s32.totalorder %s51_s15, %s51_s15 }
  0x1e   :  { %p2274_p10 = scmp.ne.s32.totalorder %s51_s15, %s2273_s16  ;;  %p2279_p12 = scmp.lt.s32.totalorder %s2273_s16, %s2273_s16 }
  0x20   :  { %p2280_p13 = por %p2279_p12, %p2278_p11 }
  0x22   :  { %p2281_p0 = pnand %p2280_p13, %p2274_p10 }
  0x24   :  { %2284 = shalt.err (!%p2281_p0)
}
  0x25   :  { %s2340_s17 = smov 256   ;;  %s2341_s18 = smov 16  }
  0x26   :  { %56 = dma.hbm_to_vmem [thread:$0]  %s2509_s4, 4096, %s51_s15, [#allocation8], %s2340_s17, %s2340_s17, %s2341_s18  }
  0x27   :  { %2325 = dma.done.wait [#allocation5], 256  }
  0x28   :  { %2326 = vsyncadd [#allocation5], 4294967040 }
  0x29   :  { %2327 = dma.done.wait [#allocation8], 19456  }
  0x2a   :  { %2328 = vsyncadd [#allocation8], 4294947840  ;;  %v1987_v0 = vld [vmem:[#allocation7 + $0xac] ss:$12 sps:$4 sm:$0xff]   ;;  %v1989_v1 = vld [vmem:[#allocation7 + $0x170] ss:$12 sps:$4 sm:$0xff]  }
  0x2b   :  { %449 = vmatprep.subr.bf16.mxu0 %v1987_v0  ;;  %v1990_v2 = vld [vmem:[#allocation7 + $0xa8] ss:$12 sps:$4 sm:$0xff]   ;;  %1864 = vmatprep.subr.bf16.mxu1 %v1989_v1  ;;  %v1991_v3 = vld [vmem:[#allocation7 + $0xb0] ss:$12 sps:$4 sm:$0xff]   ;;  %v1994_v5 = vld [vmem:[#allocation7 + $0x158] ss:$12 sps:$4 sm:$0xff]  }
  0x2c   :  { %450 = vmatpush1.bf16.msra.mxu0 %v1990_v2  ;;  %v1992_v4 = vld [vmem:[#allocation7 + $0x94] ss:$12 sps:$4 sm:$0xff]   ;;  %1865 = vmatpush3.bf16.msra.mxu1 %v1991_v3  ;;  %v1995_v6 = vld [vmem:[#allocation7 + $0x90] ss:$12 sps:$4 sm:$0xff]   ;;  %v1996_v7 = vld [vmem:[#allocation7 + $0x98] ss:$12 sps:$4 sm:$0xff]  }
  0x2d   :  { %451 = vmatprep.subr.bf16.mxu0 %v1992_v4  ;;  %1866 = vmatprep.subr.bf16.mxu1 %v1994_v5  ;;  %v1997_v8 = vld [vmem:[#allocation7 + $0x7c] ss:$12 sps:$4 sm:$0xff]   ;;  %v1999_v9 = vld [vmem:[#allocation7 + $0x140] ss:$12 sps:$4 sm:$0xff]   ;;  %v2000_v10 = vld [vmem:[#allocation7 + $0x78] ss:$12 sps:$4 sm:$0xff]  }
  0x2e   :  { %v2001_v11 = vld [vmem:[#allocation7 + $0x80] ss:$12 sps:$4 sm:$0xff]   ;;  %v2002_v12 = vld [vmem:[#allocation7 + $0x64] ss:$12 sps:$4 sm:$0xff]   ;;  %v2004_v13 = vld [vmem:[#allocation7 + $0x128] ss:$12 sps:$4 sm:$0xff]  }
  0x2f   :  { %v2005_v14 = vld [vmem:[#allocation7 + $0x60] ss:$12 sps:$4 sm:$0xff]   ;;  %v2006_v15 = vld [vmem:[#allocation7 + $0x68] ss:$12 sps:$4 sm:$0xff]   ;;  %v2009_v17 = vld [vmem:[#allocation7 + $0x110] ss:$12 sps:$4 sm:$0xff]  }
  0x30   :  { %452 = vmatpush1.bf16.msra.mxu0 %v1995_v6  ;;  %1867 = vmatpush3.bf16.msra.mxu1 %v1996_v7  ;;  %v2007_v16 = vld [vmem:[#allocation7 + $0x4c] ss:$12 sps:$4 sm:$0xff]   ;;  %v2010_v18 = vld [vmem:[#allocation7 + $0x48] ss:$12 sps:$4 sm:$0xff]   ;;  %v2011_v19 = vld [vmem:[#allocation7 + $0x50] ss:$12 sps:$4 sm:$0xff]  }
  0x31   :  { %453 = vmatprep.subr.bf16.mxu0 %v1997_v8  ;;  %1868 = vmatprep.subr.bf16.mxu1 %v1999_v9  ;;  %v2012_v20 = vld [vmem:[#allocation7 + $0x34] ss:$12 sps:$4 sm:$0xff]   ;;  %v2014_v21 = vld [vmem:[#allocation7 + $0xf8] ss:$12 sps:$4 sm:$0xff]   ;;  %v2015_v22 = vld [vmem:[#allocation7 + $0x30] ss:$12 sps:$4 sm:$0xff]  }
  0x32   :  { %v2016_v23 = vld [vmem:[#allocation7 + $0x38] ss:$12 sps:$4 sm:$0xff]   ;;  %v2017_v24 = vld [vmem:[#allocation7 + $0x1c] ss:$12 sps:$4 sm:$0xff]   ;;  %v2019_v25 = vld [vmem:[#allocation7 + $0xe0] ss:$12 sps:$4 sm:$0xff]  }
  0x33   :  { %v2020_v26 = vld [vmem:[#allocation7 + $0x18] ss:$12 sps:$4 sm:$0xff]   ;;  %v2021_v27 = vld [vmem:[#allocation7 + $0x20] ss:$12 sps:$4 sm:$0xff]   ;;  %v2024_v29 = vld [vmem:[#allocation7 + $0xc8] ss:$12 sps:$4 sm:$0xff]  }
  0x34   :  { %454 = vmatpush1.bf16.msra.mxu0 %v2000_v10  ;;  %1869 = vmatpush3.bf16.msra.mxu1 %v2001_v11  ;;  %v2022_v28 = vld [vmem:[#allocation7 + $0x4] ss:$12 sps:$4 sm:$0xff]   ;;  %v2025_v32 = vld [vmem:[#allocation7] ss:$12 sps:$4 sm:$0xff]   ;;  %v2026_v33 = vld [vmem:[#allocation7 + $0x8] ss:$12 sps:$4 sm:$0xff]  }
  0x35   :  { %455 = vmatprep.subr.bf16.mxu0 %v2002_v12  ;;  %1870 = vmatprep.subr.bf16.mxu1 %v2004_v13  ;;  %v74_v30 = vld [vmem:[%s2505_s0 + $0x8] sm:$0xff]  ;;  %v2027_v34 = vld [vmem:[#allocation7 + $0x16c] ss:$12 sps:$4 sm:$0xff]   ;;  %v73_v35 = vld [vmem:[%s2505_s0] sm:$0xff]  ;;  %v2342_v46 = vmov 0   ;;  %v2343_v8 = vmov 0.0  }
  0x36   :  { %v176_v31 = vpack.c.bf16 %v74_v30, %v74_v30  ;;  %v2031_v36 = vld [vmem:[#allocation7 + $0x22c] ss:$12 sps:$4 sm:$0xff]   ;;  %v2405_v37 = vpack.c.bf16 %v73_v35, %v73_v35  ;;  %v2029_v38 = vld [vmem:[#allocation7 + $0x228] ss:$12 sps:$4 sm:$0xff]   ;;  %v2038_v42 = vld [vmem:[#allocation7 + $0x150] ss:$12 sps:$4 sm:$0xff]  }
  0x37   :  { %v2032_v39 = vld [vmem:[#allocation7 + $0x168] ss:$12 sps:$4 sm:$0xff]   ;;  %v2035_v43 = vld [vmem:[#allocation7 + $0x210] ss:$12 sps:$4 sm:$0xff]   ;;  %v2041_v47 = vld [vmem:[#allocation7 + $0x1f8] ss:$12 sps:$4 sm:$0xff]  }
  0x38   :  { %456 = vmatpush1.bf16.msra.mxu0 %v2005_v14  ;;  %1871 = vmatpush3.bf16.msra.mxu1 %v2006_v15  ;;  %v2033_v40 = vld [vmem:[#allocation7 + $0x154] ss:$12 sps:$4 sm:$0xff]   ;;  %v2039_v44 = vld [vmem:[#allocation7 + $0x13c] ss:$12 sps:$4 sm:$0xff]   ;;  %v2044_v48 = vld [vmem:[#allocation7 + $0x138] ss:$12 sps:$4 sm:$0xff]  }
  0x39   :  { %457 = vmatprep.subr.bf16.mxu0 %v2007_v16  ;;  %1872 = vmatprep.subr.bf16.mxu1 %v2009_v17  ;;  %v2037_v41 = vld [vmem:[#allocation7 + $0x214] ss:$12 sps:$4 sm:$0xff]   ;;  %v2043_v45 = vld [vmem:[#allocation7 + $0x1fc] ss:$12 sps:$4 sm:$0xff]   ;;  %v2045_v49 = vld [vmem:[#allocation7 + $0x124] ss:$12 sps:$4 sm:$0xff]  }
  0x3a   :  { %522 = vmatprep.mubr.bf16.mxu1 %v176_v31  ;;  %481 = vmatprep.mubr.bf16.mxu0 %v176_v31  ;;  %v2049_v50 = vld [vmem:[#allocation7 + $0x1e4] ss:$12 sps:$4 sm:$0xff]   ;;  %v2050_v51 = vld [vmem:[#allocation7 + $0x120] ss:$12 sps:$4 sm:$0xff]   ;;  %v2053_v55 = vld [vmem:[#allocation7 + $0x1c8] ss:$12 sps:$4 sm:$0xff]  }
  0x3b   :  { %v2047_v52 = vld [vmem:[#allocation7 + $0x1e0] ss:$12 sps:$4 sm:$0xff]   ;;  %v2056_v56 = vld [vmem:[#allocation7 + $0x108] ss:$12 sps:$4 sm:$0xff]   ;;  %v2059_v59 = vld [vmem:[#allocation7 + $0x1b0] ss:$12 sps:$4 sm:$0xff]  }
  0x3c   :  { %458 = vmatpush1.bf16.msra.mxu0 %v2010_v18  ;;  %1873 = vmatpush3.bf16.msra.mxu1 %v2011_v19  ;;  %v2051_v53 = vld [vmem:[#allocation7 + $0x10c] ss:$12 sps:$4 sm:$0xff]   ;;  %v2057_v57 = vld [vmem:[#allocation7 + $0xf4] ss:$12 sps:$4 sm:$0xff]   ;;  %v2062_v60 = vld [vmem:[#allocation7 + $0xf0] ss:$12 sps:$4 sm:$0xff]  }
  0x3d   :  { %459 = vmatprep.subr.bf16.mxu0 %v2012_v20  ;;  %1874 = vmatprep.subr.bf16.mxu1 %v2014_v21  ;;  %v2055_v54 = vld [vmem:[#allocation7 + $0x1cc] ss:$12 sps:$4 sm:$0xff]   ;;  %v2061_v58 = vld [vmem:[#allocation7 + $0x1b4] ss:$12 sps:$4 sm:$0xff]   ;;  %v2063_v61 = vld [vmem:[#allocation7 + $0xdc] ss:$12 sps:$4 sm:$0xff]  }
  0x3e   :  { %v2067_v62 = vld [vmem:[#allocation7 + $0x19c] ss:$12 sps:$4 sm:$0xff]   ;;  %v2068_v63 = vld [vmem:[#allocation7 + $0xd8] ss:$12 sps:$4 sm:$0xff]   ;;  %v2074_v3 = vld [vmem:[#allocation7 + $0xc0] ss:$12 sps:$4 sm:$0xff]  }
  0x3f   :  { %v2065_v0 = vld [vmem:[#allocation7 + $0x198] ss:$12 sps:$4 sm:$0xff]   ;;  %v2071_v4 = vld [vmem:[#allocation7 + $0x180] ss:$12 sps:$4 sm:$0xff]   ;;  %v2409_v5 = vld [vmem:[#allocation4] sm:$0xff]  ;;  %vm2344_vm0 = vmmov 0  }
  0x40   :  { %460 = vmatpush1.bf16.msra.mxu0 %v2015_v22  ;;  %1875 = vmatpush3.bf16.msra.mxu1 %v2016_v23  ;;  %v2069_v1 = vld [vmem:[#allocation7 + $0xc4] ss:$12 sps:$4 sm:$0xff]   ;;  %v530_v7 = vpack.c.bf16 %v2409_v5, %v2409_v5  ;;  %v2077_v10 = vld [vmem:[#allocation7 + $0x200] ss:$12 sps:$4 sm:$0xff]   ;;  %v2078_v11 = vld [vmem:[#allocation7 + $0x1e8] ss:$12 sps:$4 sm:$0xff]  }
  0x41   :  { %461 = vmatprep.subr.bf16.mxu0 %v2017_v24  ;;  %1876 = vmatprep.subr.bf16.mxu1 %v2019_v25  ;;  %v2073_v2 = vld [vmem:[#allocation7 + $0x184] ss:$12 sps:$4 sm:$0xff]   ;;  %v2081_v14 = vld [vmem:[#allocation7 + $0x1a0] ss:$12 sps:$4 sm:$0xff]   ;;  %v2082_v15 = vld [vmem:[#allocation7 + $0x188] ss:$12 sps:$4 sm:$0xff]  }
  0x42   :  { %v2075_v6 = vld [vmem:[#allocation7 + $0x230] ss:$12 sps:$4 sm:$0xff]   ;;  %v2076_v9 = vld [vmem:[#allocation7 + $0x218] ss:$12 sps:$4 sm:$0xff]   ;;  %v2083_v16 = vld [vmem:[#allocation7 + $0x2e8] ss:$12 sps:$4 sm:$0xff]  }
  0x43   :  { %v2079_v12 = vld [vmem:[#allocation7 + $0x1d0] ss:$12 sps:$4 sm:$0xff]   ;;  %v2080_v13 = vld [vmem:[#allocation7 + $0x1b8] ss:$12 sps:$4 sm:$0xff]   ;;  %v2089_v19 = vld [vmem:[#allocation7 + $0x2d4] ss:$12 sps:$4 sm:$0xff]  }
  0x44   :  { %462 = vmatpush1.bf16.msra.mxu0 %v2020_v26  ;;  %1877 = vmatpush3.bf16.msra.mxu1 %v2021_v27  ;;  %v2085_v17 = vld [vmem:[#allocation7 + $0x2ec] ss:$12 sps:$4 sm:$0xff]   ;;  %v2086_v18 = vld [vmem:[#allocation7 + $0x2f0] ss:$12 sps:$4 sm:$0xff]   ;;  %v2098_v27 = vld [vmem:[#allocation7 + $0x2a8] ss:$12 sps:$4 sm:$0xff]  }
  0x45   :  { %463 = vmatprep.subr.bf16.mxu0 %v2022_v28  ;;  %1878 = vmatprep.subr.bf16.mxu1 %v2024_v29  ;;  %v2087_v20 = vld [vmem:[#allocation7 + $0x2d0] ss:$12 sps:$4 sm:$0xff]   ;;  %v2090_v21 = vld [vmem:[#allocation7 + $0x2d8] ss:$12 sps:$4 sm:$0xff]   ;;  %v2094_v24 = vld [vmem:[#allocation7 + $0x2c0] ss:$12 sps:$4 sm:$0xff]  }
  0x46   :  { %v2093_v22 = vld [vmem:[#allocation7 + $0x2bc] ss:$12 sps:$4 sm:$0xff]   ;;  %v2091_v23 = vld [vmem:[#allocation7 + $0x2b8] ss:$12 sps:$4 sm:$0xff]   ;;  %v2095_v26 = vld [vmem:[#allocation7 + $0x2a0] ss:$12 sps:$4 sm:$0xff]  }
  0x47   :  { %v2097_v25 = vld [vmem:[#allocation7 + $0x2a4] ss:$12 sps:$4 sm:$0xff]   ;;  %v2099_v28 = vld [vmem:[#allocation7 + $0x288] ss:$12 sps:$4 sm:$0xff]   ;;  %v2101_v29 = vld [vmem:[#allocation7 + $0x28c] ss:$12 sps:$4 sm:$0xff]  }
  0x48   :  { %464 = vmatpush1.bf16.msra.mxu0 %v2025_v32  ;;  %1879 = vmatpush3.bf16.msra.mxu1 %v2026_v33  ;;  %v2102_v30 = vld [vmem:[#allocation7 + $0x290] ss:$12 sps:$4 sm:$0xff]   ;;  %v2105_v31 = vld [vmem:[#allocation7 + $0x274] ss:$12 sps:$4 sm:$0xff]   ;;  %v2106_v33 = vld [vmem:[#allocation7 + $0x278] ss:$12 sps:$4 sm:$0xff]  }
  0x49   :  { %465 = vmatprep.subr.bf16.mxu0 %v2027_v34  ;;  %675 = vmatprep.subr.bf16.mxu1 %v2031_v36  ;;  %v2103_v32 = vld [vmem:[#allocation7 + $0x270] ss:$12 sps:$4 sm:$0xff]   ;;  %v2107_v35 = vld [vmem:[#allocation7 + $0x258] ss:$12 sps:$4 sm:$0xff]   ;;  %v2110_v36 = vld [vmem:[#allocation7 + $0x260] ss:$12 sps:$4 sm:$0xff]  }
  0x4a   :  { %v2109_v34 = vld [vmem:[#allocation7 + $0x25c] ss:$12 sps:$4 sm:$0xff]  }
  0x4b   :  { %523 = vmatmul.mubr.bf16.vlgmr.msra.gmra.mxu1 %v2405_v37 }
  0x4c   :  { %466 = vmatpush2.bf16.msra.mxu0 %v2032_v39  ;;  %676 = vmatpush1.bf16.msra.mxu1 %v2029_v38  ;;  %v2111_v38 = vld [vmem:[#allocation7 + $0x240] ss:$12 sps:$4 sm:$0xff]   ;;  %v2114_v39 = vld [vmem:[#allocation7 + $0x248] ss:$12 sps:$4 sm:$0xff]  }
  0x4d   :  { %467 = vmatprep.subr.bf16.mxu0 %v2033_v40  ;;  %677 = vmatprep.subr.bf16.mxu1 %v2037_v41  ;;  %v2117_v40 = vld [vmem:[#allocation7 + $0x3ac] ss:$12 sps:$4 sm:$0xff]  }
  0x4e   :  { %707 = vmatprep.mubr.bf16.mxu1 %v2342_v46 }
  0x50   :  { %468 = vmatpush2.bf16.msra.mxu0 %v2038_v42  ;;  %678 = vmatpush1.bf16.msra.mxu1 %v2035_v43 }
  0x51   :  { %469 = vmatprep.subr.bf16.mxu0 %v2039_v44  ;;  %679 = vmatprep.subr.bf16.mxu1 %v2043_v45 }
  0x54   :  { %470 = vmatpush2.bf16.msra.mxu0 %v2044_v48  ;;  %680 = vmatpush1.bf16.msra.mxu1 %v2041_v47  ;;  %v178_v47 = vlaneseq }
  0x55   :  { %471 = vmatprep.subr.bf16.mxu0 %v2045_v49  ;;  %681 = vmatprep.subr.bf16.mxu1 %v2049_v50  ;;  %v1705_v50 = vld [vmem:[%s2508_s3 + $0x1] ss:$4 sm:$0x7] }
  0x56   :  { %v2436_v48 = vshrl.u32 %v178_v47, 7  ;;  %v2143_v47 = vld [vmem:[#allocation7 + $0x350] ss:$12 sps:$4 sm:$0xff]  }
  0x58   :  { %472 = vmatpush2.bf16.msra.mxu0 %v2050_v51  ;;  %682 = vmatpush1.bf16.msra.mxu1 %v2047_v52  ;;  %v2439_v49 = vsub.s32 0, %v2436_v48  ;;  %v171_v51 = vld [vmem:[%s2508_s3] ss:$4 sm:$0x7] }
  0x59   :  { %473 = vmatprep.subr.bf16.mxu0 %v2051_v53  ;;  %683 = vmatprep.subr.bf16.mxu1 %v2055_v54  ;;  %v2450_v54 = vsub.s32 1, %v2436_v48 }
  0x5a   :  { %v181_v52 = vrot.slane %v171_v51, %v2439_v49  ;;  %v535_v53 = vrot.slane %v1705_v50, %v2439_v49 }
  0x5c   :  { %474 = vmatpush2.bf16.msra.mxu0 %v2056_v56  ;;  %684 = vmatpush1.bf16.msra.mxu1 %v2053_v55 }
  0x5d   :  { %475 = vmatprep.subr.bf16.mxu0 %v2057_v57  ;;  %685 = vmatprep.subr.bf16.mxu1 %v2061_v58 }
  0x60   :  { %476 = vmatpush2.bf16.msra.mxu0 %v2062_v60  ;;  %686 = vmatpush1.bf16.msra.mxu1 %v2059_v59  ;;  %v185_v59 = vrot.slane %v171_v51, %v2450_v54 }
  0x61   :  { %477 = vmatprep.subr.bf16.mxu0 %v2063_v61  ;;  %687 = vmatprep.subr.bf16.mxu1 %v2067_v62  ;;  %v539_v61 = vrot.slane %v1705_v50, %v2450_v54 }
  0x64   :  { %478 = vmatpush2.bf16.msra.mxu0 %v2068_v63  ;;  %688 = vmatpush1.bf16.msra.mxu1 %v2065_v0 }
  0x65   :  { %479 = vmatprep.subr.bf16.mxu0 %v2069_v1  ;;  %689 = vmatprep.subr.bf16.mxu1 %v2073_v2 }
  0x68   :  { %480 = vmatpush2.bf16.msra.mxu0 %v2074_v3  ;;  %690 = vmatpush1.bf16.msra.mxu1 %v2071_v4 }
  0x69   :  { %1913 = vmatprep.subr.bf16.mxu0 %v2343_v8  ;;  %993 = vmatprep.subr.bf16.mxu1 %v2085_v17 }
  0x6b   :  { %482 = vmatmul.mubr.bf16.vlgmr.msra.gmra.mxu0 %v2405_v37  ;;  %708 = vmatmul.mubr.bf16.vlgmr.msra.gmra.mxu1 %v530_v7  ;;  %v2113_v37 = vld [vmem:[#allocation7 + $0x244] ss:$12 sps:$4 sm:$0xff]  }
  0x6c   :  { %1914 = vmatpush3.bf16.msra.mxu0 %v2075_v6  ;;  %1929 = vmatprep.mubr.msk.bf16.mxu0 %vm2344_vm0, %v2343_v8 }
  0x6d   :  { %1915 = vmatprep.subr.bf16.mxu0 %v2343_v8  ;;  %1025 = vmatprep.mubr.bf16.mxu1 %v2342_v46 }
  0x6e   :  { %994 = vmatpush1.bf16.msra.mxu1 %v2083_v16 }
  0x6f   :  { %995 = vmatprep.subr.bf16.mxu1 %v2089_v19 }
  0x70   :  { %1916 = vmatpush3.bf16.msra.mxu0 %v2076_v9 }
  0x71   :  { %1917 = vmatprep.subr.bf16.mxu0 %v2343_v8 }
  0x72   :  { %996 = vmatpush1.bf16.msra.mxu1 %v2087_v20 }
  0x73   :  { %997 = vmatprep.subr.bf16.mxu1 %v2093_v22 }
  0x74   :  { %1918 = vmatpush3.bf16.msra.mxu0 %v2077_v10 }
  0x75   :  { %1919 = vmatprep.subr.bf16.mxu0 %v2343_v8 }
  0x76   :  { %998 = vmatpush1.bf16.msra.mxu1 %v2091_v23 }
  0x77   :  { %999 = vmatprep.subr.bf16.mxu1 %v2097_v25 }
  0x78   :  { %1920 = vmatpush3.bf16.msra.mxu0 %v2078_v11 }
  0x79   :  { %1921 = vmatprep.subr.bf16.mxu0 %v2343_v8 }
  0x7a   :  { %1000 = vmatpush1.bf16.msra.mxu1 %v2095_v26 }
  0x7b   :  { %1001 = vmatprep.subr.bf16.mxu1 %v2101_v29 }
  0x7c   :  { %1922 = vmatpush3.bf16.msra.mxu0 %v2079_v12 }
  0x7d   :  { %1923 = vmatprep.subr.bf16.mxu0 %v2343_v8 }
  0x7e   :  { %1002 = vmatpush1.bf16.msra.mxu1 %v2099_v28 }
  0x7f   :  { %1003 = vmatprep.subr.bf16.mxu1 %v2105_v31 }
  0x80   :  { %1924 = vmatpush3.bf16.msra.mxu0 %v2080_v13  ;;  %v2455_v13 = vsub.s32 2, %v2436_v48 }
  0x81   :  { %1925 = vmatprep.subr.bf16.mxu0 %v2343_v8 }
  0x82   :  { %1004 = vmatpush1.bf16.msra.mxu1 %v2103_v32  ;;  %v189_v17 = vrot.slane %v171_v51, %v2455_v13  ;;  %v2130_v51 = vld [vmem:[#allocation7 + $0x330] ss:$12 sps:$4 sm:$0xff]  }
  0x83   :  { %1005 = vmatprep.subr.bf16.mxu1 %v2109_v34  ;;  %v2139_v34 = vld [vmem:[#allocation7 + $0x3b0] ss:$12 sps:$4 sm:$0xff]  }
  0x84   :  { %1926 = vmatpush3.bf16.msra.mxu0 %v2081_v14  ;;  %v543_v14 = vrot.slane %v1705_v50, %v2455_v13  ;;  %v2132_v50 = vld [vmem:[#allocation7 + $0x334] ss:$12 sps:$4 sm:$0xff]  }
  0x85   :  { %1927 = vmatprep.subr.bf16.mxu0 %v2343_v8 }
  0x86   :  { %1006 = vmatpush1.bf16.msra.mxu1 %v2107_v35 }
  0x87   :  { %1007 = vmatprep.subr.bf16.mxu1 %v2113_v37  ;;  %v2118_v37 = vld [vmem:[#allocation7 + $0x390] ss:$12 sps:$4 sm:$0xff]  }
  0x88   :  { %1928 = vmatpush3.bf16.msra.mxu0 %v2082_v15 }
  0x89   :  { %1933 = vmatprep.subr.bf16.mxu0 %v2343_v8 }
  0x8a   :  { %1008 = vmatpush1.bf16.msra.mxu1 %v2111_v38  ;;  %v2140_v38 = vld [vmem:[#allocation7 + $0x398] ss:$12 sps:$4 sm:$0xff]  }
  0x8b   :  { %1930 = vmatmul.mubr.bf16.vlgmr.msra.gmra.mxu0 %v530_v7  ;;  %1219 = vmatprep.subr.bf16.mxu1 %v2117_v40  ;;  %v2141_v40 = vld [vmem:[#allocation7 + $0x380] ss:$12 sps:$4 sm:$0xff]  }
  0x8c   :  { %1949 = vmatprep.mubr.msk.bf16.mxu0 %vm2344_vm0, %v2343_v8  ;;  %1934 = vmatpush3.bf16.msra.mxu0 %v2086_v18 }
  0x8d   :  { %1935 = vmatprep.subr.bf16.mxu0 %v2343_v8 }
  0x90   :  { %1936 = vmatpush3.bf16.msra.mxu0 %v2090_v21 }
  0x91   :  { %1937 = vmatprep.subr.bf16.mxu0 %v2343_v8 }
  0x94   :  { %1938 = vmatpush3.bf16.msra.mxu0 %v2094_v24 }
  0x95   :  { %1939 = vmatprep.subr.bf16.mxu0 %v2343_v8 }
  0x98   :  { %1940 = vmatpush3.bf16.msra.mxu0 %v2098_v27 }
  0x99   :  { %1941 = vmatprep.subr.bf16.mxu0 %v2343_v8 }
  0x9c   :  { %1942 = vmatpush3.bf16.msra.mxu0 %v2102_v30 }
  0x9d   :  { %1943 = vmatprep.subr.bf16.mxu0 %v2343_v8 }
  0xa0   :  { %1944 = vmatpush3.bf16.msra.mxu0 %v2106_v33  ;;  %v2115_v33 = vld [vmem:[#allocation7 + $0x3a8] ss:$12 sps:$4 sm:$0xff]  }
  0xa1   :  { %1945 = vmatprep.subr.bf16.mxu0 %v2343_v8 }
  0xa4   :  { %1946 = vmatpush3.bf16.msra.mxu0 %v2110_v36  ;;  %v2120_v36 = vld [vmem:[#allocation7 + $0x394] ss:$12 sps:$4 sm:$0xff]  }
  0xa5   :  { %1947 = vmatprep.subr.bf16.mxu0 %v2343_v8 }
  0xa8   :  { %1948 = vmatpush3.bf16.msra.mxu0 %v2114_v39  ;;  %v2123_v39 = vld [vmem:[#allocation7 + $0x37c] ss:$12 sps:$4 sm:$0xff]  }
  0xa9   :  { %1953 = vmatprep.subr.bf16.mxu0 %v2343_v8 }
 0x10b   :  { %v1880_v41 = vpop.f32.mrf.mxu1 }
 0x10d   :  { %v1881_v42 = vpop.f32.mrf.mxu1 }
 0x10e   :  { %v1882_v43 = vadd.f32 %v1881_v42, %v1880_v41  ;;  %v2126_v41 = vld [vmem:[#allocation7 + $0x364] ss:$12 sps:$4 sm:$0xff]   ;;  %v2124_v42 = vld [vmem:[#allocation7 + $0x360] ss:$12 sps:$4 sm:$0xff]  }
 0x10f   :  { %v1883_v44 = vpop.f32.mrf.mxu1 }
 0x110   :  { %v525_v23 = vadd.f32 %v1882_v43, %v189_v17  ;;  %v2142_v43 = vld [vmem:[#allocation7 + $0x368] ss:$12 sps:$4 sm:$0xff]   ;;  %v2129_v44 = vld [vmem:[#allocation7 + $0x34c] ss:$12 sps:$4 sm:$0xff]   ;;  %v2171_v17 = vld [vmem:[#allocation9 + $0x60] ss:$16 sps:$4 sm:$0xff]  }
 0x111   :  { %v1884_v45 = vpop.f32.mrf.mxu1 }
 0x112   :  { %v2127_v45 = vld [vmem:[#allocation7 + $0x348] ss:$12 sps:$4 sm:$0xff]  }
 0x12b   :  { %v483_v55 = vpop.f32.mrf.mxu0  ;;  %v709_v57 = vpop.f32.mrf.mxu1 }
 0x12c   :  { %v484_v56 = vadd.f32 %v483_v55, %v181_v52  ;;  %v710_v58 = vadd.f32 %v709_v57, %v535_v53  ;;  %v2144_v52 = vld [vmem:[#allocation7 + $0x338] ss:$12 sps:$4 sm:$0xff]   ;;  %v2135_v53 = vld [vmem:[#allocation7 + $0x31c] ss:$12 sps:$4 sm:$0xff]  }
 0x12d   :  { %v485_v60 = vpop.f32.mrf.mxu0  ;;  %v711_v62 = vpop.f32.mrf.mxu1  ;;  %v2133_v55 = vld [vmem:[#allocation7 + $0x318] ss:$12 sps:$4 sm:$0xff]  }
 0x12e   :  { %v756_v63 = vadd.f32 %v710_v58, %v484_v56  ;;  %v486_v3 = vadd.f32 %v485_v60, %v185_v59  ;;  %v712_v4 = vadd.f32 %v711_v62, %v539_v61  ;;  %v2145_v56 = vld [vmem:[#allocation7 + $0x320] ss:$12 sps:$4 sm:$0xff]   ;;  %v2138_v57 = vld [vmem:[#allocation7 + $0x304] ss:$12 sps:$4 sm:$0xff]   ;;  %v2469_v59 = vld [vmem:[#allocation4 + $0x8] sm:$0xff] }
 0x12f   :  { %v487_v0 = vpop.f32.mrf.mxu0  ;;  %v713_v1 = vpop.f32.mrf.mxu1  ;;  %v2136_v58 = vld [vmem:[#allocation7 + $0x300] ss:$12 sps:$4 sm:$0xff]   ;;  %v2146_v60 = vld [vmem:[#allocation7 + $0x308] ss:$12 sps:$4 sm:$0xff]   ;;  %v1074_v61 = vpack.c.bf16 %v2469_v59, %v2469_v59 }
 0x130   :  { %v1778_v2 = vmul.f32 -1.442695, %v756_v63  ;;  %v763_v9 = vadd.f32 %v712_v4, %v486_v3  ;;  %v2149_v62 = vld [vmem:[#allocation9 + $0xe4] ss:$16 sps:$4 sm:$0xff]   ;;  %v2152_v63 = vld [vmem:[#allocation9 + $0xec] ss:$16 sps:$4 sm:$0xff]  }
 0x131   :  { %v488_v6 = vpop.f32.mrf.mxu0  ;;  %v714_v7 = vpop.f32.mrf.mxu1  ;;  %v2147_v0 = vld [vmem:[#allocation9 + $0xe0] ss:$16 sps:$4 sm:$0xff]   ;;  %v2150_v1 = vld [vmem:[#allocation9 + $0xe8] ss:$16 sps:$4 sm:$0xff]  }
 0x132   :  { %2195 = vpow2.f32 %v1778_v2  ;;  %v1779_v10 = vmul.f32 -1.442695, %v763_v9  ;;  %v2158_v2 = vld [vmem:[#allocation9 + $0xcc] ss:$16 sps:$4 sm:$0xff]   ;;  %v2153_v3 = vld [vmem:[#allocation9 + $0xc0] ss:$16 sps:$4 sm:$0xff]  }
 0x133   :  { %v2156_v4 = vld [vmem:[#allocation9 + $0xc8] ss:$16 sps:$4 sm:$0xff]   ;;  %v2161_v6 = vld [vmem:[#allocation9 + $0xa4] ss:$16 sps:$4 sm:$0xff]   ;;  %v2164_v7 = vld [vmem:[#allocation9 + $0xac] ss:$16 sps:$4 sm:$0xff]  }
 0x134   :  { %2197 = vpow2.f32 %v1779_v10  ;;  %v2159_v9 = vld [vmem:[#allocation9 + $0xa0] ss:$16 sps:$4 sm:$0xff]   ;;  %v2167_v10 = vld [vmem:[#allocation9 + $0x84] ss:$16 sps:$4 sm:$0xff]  }
 0x13f   :  { %v2196_v11 = vpop.eup %2195 }
 0x140   :  { %v760_v12 = vadd.f32 1.0, %v2196_v11  ;;  %v2170_v11 = vld [vmem:[#allocation9 + $0x8c] ss:$16 sps:$4 sm:$0xff]  }
 0x141   :  { %v2198_v15 = vpop.eup %2197 }
 0x142   :  { %2199 = vrcp.f32 %v760_v12  ;;  %v767_v18 = vadd.f32 1.0, %v2198_v15  ;;  %v2165_v12 = vld [vmem:[#allocation9 + $0x80] ss:$16 sps:$4 sm:$0xff]   ;;  %v2173_v15 = vld [vmem:[#allocation9 + $0x64] ss:$16 sps:$4 sm:$0xff]  }
 0x144   :  { %2201 = vrcp.f32 %v767_v18  ;;  %v2174_v18 = vld [vmem:[#allocation9 + $0x68] ss:$16 sps:$4 sm:$0xff]  }
 0x14b   :  { %v750_v16 = vpop.f32.mrf.mxu0 }
 0x14c   :  { %v751_v19 = vadd.f32 %v750_v16, %v543_v14  ;;  %v2168_v14 = vld [vmem:[#allocation9 + $0x88] ss:$16 sps:$4 sm:$0xff]   ;;  %v2176_v16 = vld [vmem:[#allocation9 + $0x6c] ss:$16 sps:$4 sm:$0xff]  }
 0x14d   :  { %v1931_v20 = vpop.f32.mrf.mxu0 }
 0x14e   :  { %v2182_v20 = vld [vmem:[#allocation9 + $0x4c] ss:$16 sps:$4 sm:$0xff]  }
 0x14f   :  { %v753_v21 = vpop.f32.mrf.mxu0  ;;  %v2200_v22 = vpop.eup %2199 }
 0x150   :  { %v770_v24 = vmul.f32 %v2200_v22, %v751_v19  ;;  %v2179_v19 = vld [vmem:[#allocation9 + $0x44] ss:$16 sps:$4 sm:$0xff]   ;;  %v2177_v21 = vld [vmem:[#allocation9 + $0x40] ss:$16 sps:$4 sm:$0xff]   ;;  %v2180_v22 = vld [vmem:[#allocation9 + $0x48] ss:$16 sps:$4 sm:$0xff]  }
 0x151   :  { %v1932_v25 = vpop.f32.mrf.mxu0  ;;  %v2202_v27 = vpop.eup %2201 }
 0x152   :  { %v771_v26 = vadd.f32 %v770_v24, %v525_v23  ;;  %v773_v28 = vsub.f32 1.0, %v2202_v27  ;;  %v775_v31 = vmul.f32 %v2202_v27, %v2409_v5  ;;  %v2121_v5 = vld [vmem:[#allocation7 + $0x378] ss:$12 sps:$4 sm:$0xff]   ;;  %v2188_v24 = vld [vmem:[#allocation9 + $0x2c] ss:$16 sps:$4 sm:$0xff]  }
 0x153   :  { %v2185_v23 = vld [vmem:[#allocation9 + $0x24] ss:$16 sps:$4 sm:$0xff]   ;;  %v2183_v25 = vld [vmem:[#allocation9 + $0x20] ss:$16 sps:$4 sm:$0xff]  }
 0x154   :  { %2203 = vtanh.f32 %v771_v26  ;;  %v2186_v26 = vld [vmem:[#allocation9 + $0x28] ss:$16 sps:$4 sm:$0xff]   ;;  %v2191_v27 = vld [vmem:[#allocation9 + $0x4] ss:$16 sps:$4 sm:$0xff]  }
 0x161   :  { %v2204_v29 = vpop.eup %2203 }
 0x162   :  { %v774_v30 = vmul.f32 %v2204_v29, %v773_v28  ;;  %v2189_v28 = vld [vmem:[#allocation9] ss:$16 sps:$4 sm:$0xff]   ;;  %v2192_v29 = vld [vmem:[#allocation9 + $0x8] ss:$16 sps:$4 sm:$0xff]  }
 0x164   :  { %v776_v32 = vadd.f32 %v775_v31, %v774_v30  ;;  %v2194_v30 = vld [vmem:[#allocation9 + $0xc] ss:$16 sps:$4 sm:$0xff]  }
 0x166   :  { %v848_v35 = vpack.c.bf16 %v776_v32, %v776_v32  ;;  %777 = vst [vmem:[#allocation11] sm:$0xff] %v776_v32 }
 0x168   :  { %1026 = vmatmul.mubr.bf16.vlgmr.msra.gmra.mxu1 %v848_v35  ;;  %1950 = vmatmul.mubr.bf16.vlgmr.msra.gmra.mxu0 %v848_v35 }
 0x169   :  { %1220 = vmatpush1.bf16.msra.mxu1 %v2115_v33  ;;  %1954 = vmatpush3.bf16.msra.mxu0 %v2139_v34 }
 0x16a   :  { %1221 = vmatprep.subr.bf16.mxu1 %v2120_v36  ;;  %1251 = vmatprep.mubr.bf16.mxu1 %v2342_v46 }
 0x16b   :  { %1955 = vmatprep.subr.bf16.mxu0 %v2343_v8  ;;  %1969 = vmatprep.mubr.msk.bf16.mxu0 %vm2344_vm0, %v2343_v8 }
 0x16d   :  { %1222 = vmatpush1.bf16.msra.mxu1 %v2118_v37  ;;  %1956 = vmatpush3.bf16.msra.mxu0 %v2140_v38 }
 0x16e   :  { %1223 = vmatprep.subr.bf16.mxu1 %v2123_v39  ;;  %1957 = vmatprep.subr.bf16.mxu0 %v2343_v8  ;;  %v1780_v39 = vld [vmem:[%s2508_s3 + $0x2] ss:$4 sm:$0x7] }
 0x171   :  { %1224 = vmatpush1.bf16.msra.mxu1 %v2121_v5  ;;  %1958 = vmatpush3.bf16.msra.mxu0 %v2141_v40  ;;  %v1781_v5 = vld [vmem:[%s2508_s3 + $0x3] ss:$4 sm:$0x7]  ;;  %v853_v40 = vrot.slane %v1780_v39, %v2439_v49 }
 0x172   :  { %1225 = vmatprep.subr.bf16.mxu1 %v2126_v41  ;;  %1959 = vmatprep.subr.bf16.mxu0 %v2343_v8  ;;  %v1079_v41 = vrot.slane %v1781_v5, %v2439_v49 }
 0x175   :  { %1226 = vmatpush1.bf16.msra.mxu1 %v2124_v42  ;;  %1960 = vmatpush3.bf16.msra.mxu0 %v2142_v43 }
 0x176   :  { %1227 = vmatprep.subr.bf16.mxu1 %v2129_v44  ;;  %1961 = vmatprep.subr.bf16.mxu0 %v2343_v8 }
 0x179   :  { %1228 = vmatpush1.bf16.msra.mxu1 %v2127_v45  ;;  %1962 = vmatpush3.bf16.msra.mxu0 %v2143_v47  ;;  %v1083_v47 = vrot.slane %v1781_v5, %v2450_v54 }
 0x17a   :  { %1229 = vmatprep.subr.bf16.mxu1 %v2132_v50  ;;  %1963 = vmatprep.subr.bf16.mxu0 %v2343_v8 }
 0x17d   :  { %1230 = vmatpush1.bf16.msra.mxu1 %v2130_v51  ;;  %1964 = vmatpush3.bf16.msra.mxu0 %v2144_v52  ;;  %v857_v52 = vrot.slane %v1780_v39, %v2450_v54 }
 0x17e   :  { %1231 = vmatprep.subr.bf16.mxu1 %v2135_v53  ;;  %1965 = vmatprep.subr.bf16.mxu0 %v2343_v8 }
 0x181   :  { %1232 = vmatpush1.bf16.msra.mxu1 %v2133_v55  ;;  %1966 = vmatpush3.bf16.msra.mxu0 %v2145_v56 }
 0x182   :  { %1233 = vmatprep.subr.bf16.mxu1 %v2138_v57  ;;  %1967 = vmatprep.subr.bf16.mxu0 %v2343_v8  ;;  %v2155_v8 = vld [vmem:[#allocation9 + $0xc4] ss:$16 sps:$4 sm:$0xff]  }
 0x185   :  { %1234 = vmatpush1.bf16.msra.mxu1 %v2136_v58  ;;  %1968 = vmatpush3.bf16.msra.mxu0 %v2146_v60 }
 0x186   :  { %1540 = vmatprep.subr.bf16.mxu1 %v2149_v62  ;;  %1581 = vmatprep.subr.bf16.mxu0 %v2152_v63 }
 0x188   :  { %1252 = vmatmul.mubr.bf16.vlgmr.msra.gmra.mxu1 %v1074_v61  ;;  %1970 = vmatmul.mubr.bf16.vlgmr.msra.gmra.mxu0 %v1074_v61 }
 0x189   :  { %1572 = vmatprep.mubr.bf16.mxu1 %v2342_v46  ;;  %1613 = vmatprep.mubr.bf16.mxu0 %v2342_v46  ;;  %v2162_v46 = vld [vmem:[#allocation9 + $0xa8] ss:$16 sps:$4 sm:$0xff]  }
 0x18a   :  { %1541 = vmatpush1.bf16.msra.mxu1 %v2147_v0  ;;  %1582 = vmatpush1.bf16.msra.mxu0 %v2150_v1 }
 0x18b   :  { %1542 = vmatprep.subr.bf16.mxu1 %v2155_v8  ;;  %1583 = vmatprep.subr.bf16.mxu0 %v2158_v2  ;;  %v1087_v2 = vrot.slane %v1781_v5, %v2455_v13 }
 0x18e   :  { %1543 = vmatpush1.bf16.msra.mxu1 %v2153_v3  ;;  %1584 = vmatpush1.bf16.msra.mxu0 %v2156_v4  ;;  %v861_v4 = vrot.slane %v1780_v39, %v2455_v13 }
 0x18f   :  { %1544 = vmatprep.subr.bf16.mxu1 %v2161_v6  ;;  %1585 = vmatprep.subr.bf16.mxu0 %v2164_v7 }
 0x192   :  { %1545 = vmatpush1.bf16.msra.mxu1 %v2159_v9  ;;  %1586 = vmatpush1.bf16.msra.mxu0 %v2162_v46 }
 0x193   :  { %1546 = vmatprep.subr.bf16.mxu1 %v2167_v10  ;;  %1587 = vmatprep.subr.bf16.mxu0 %v2170_v11 }
 0x196   :  { %1547 = vmatpush1.bf16.msra.mxu1 %v2165_v12  ;;  %1588 = vmatpush1.bf16.msra.mxu0 %v2168_v14 }
 0x197   :  { %1548 = vmatprep.subr.bf16.mxu1 %v2173_v15  ;;  %1589 = vmatprep.subr.bf16.mxu0 %v2176_v16 }
 0x19a   :  { %1549 = vmatpush1.bf16.msra.mxu1 %v2171_v17  ;;  %1590 = vmatpush1.bf16.msra.mxu0 %v2174_v18 }
 0x19b   :  { %1550 = vmatprep.subr.bf16.mxu1 %v2179_v19  ;;  %1591 = vmatprep.subr.bf16.mxu0 %v2182_v20 }
 0x19e   :  { %1551 = vmatpush1.bf16.msra.mxu1 %v2177_v21  ;;  %1592 = vmatpush1.bf16.msra.mxu0 %v2180_v22  ;;  %v1374_v21 = vsub.s32 3, %v2436_v48  ;;  %v1358_v22 = vld [vmem:[%s2510_s5] sm:$0xf]  ;;  %s2345_s5 = smov [#allocation11]  }
 0x19f   :  { %1552 = vmatprep.subr.bf16.mxu1 %v2185_v23  ;;  %1593 = vmatprep.subr.bf16.mxu0 %v2188_v24  ;;  %v1363_v23 = vrot.slane %v1358_v22, %v2439_v49  ;;  %v1371_v24 = vrot.slane %v1358_v22, %v2455_v13  ;;  %s1686_s8 = sshll.u32 %s2345_s5, 4  ;;  %s1687_s8 = int_to_ptr.vmem [resolvable:$true] %s1686_s8 }
 0x1a0   :  { %s2285_s9 = scalar_lea.vmem %s1687_s8, 256  ;;  %p2290_p2 = scmp.lt.s32.totalorder %s1687_s8, %s1687_s8 }
 0x1a1   :  { %p2286_p1 = scmp.ne.s32.totalorder %s1687_s8, %s2285_s9  ;;  %p2291_p3 = scmp.lt.s32.totalorder %s2285_s9, %s2285_s9 }
 0x1a2   :  { %1553 = vmatpush1.bf16.msra.mxu1 %v2183_v25  ;;  %1594 = vmatpush1.bf16.msra.mxu0 %v2186_v26  ;;  %v1375_v25 = vrot.slane %v1358_v22, %v1374_v21 }
 0x1a3   :  { %1554 = vmatprep.subr.bf16.mxu1 %v2191_v27  ;;  %1595 = vmatprep.subr.bf16.mxu0 %v2194_v30  ;;  %p2292_p4 = por %p2291_p3, %p2290_p2 }
 0x1a5   :  { %p2293_p5 = pnand %p2292_p4, %p2286_p1 }
 0x1a6   :  { %1555 = vmatpush1.bf16.msra.mxu1 %v2189_v28  ;;  %1596 = vmatpush1.bf16.msra.mxu0 %v2192_v29 }
 0x228   :  { %v1027_v31 = vpop.f32.mrf.mxu1  ;;  %v1068_v32 = vpop.f32.mrf.mxu0 }
 0x229   :  { %v1028_v44 = vadd.f32 %v1027_v31, %v853_v40  ;;  %v1069_v46 = vadd.f32 %v1068_v32, %v861_v4 }
 0x22a   :  { %v1029_v33 = vpop.f32.mrf.mxu1  ;;  %v1951_v34 = vpop.f32.mrf.mxu0 }
 0x22b   :  { %v1030_v62 = vadd.f32 %v1029_v33, %v857_v52 }
 0x22c   :  { %v1031_v35 = vpop.f32.mrf.mxu1  ;;  %v1071_v36 = vpop.f32.mrf.mxu0 }
 0x22e   :  { %v1032_v37 = vpop.f32.mrf.mxu1  ;;  %v1952_v38 = vpop.f32.mrf.mxu0 }
 0x248   :  { %v1253_v42 = vpop.f32.mrf.mxu1  ;;  %v1294_v43 = vpop.f32.mrf.mxu0 }
 0x249   :  { %v1254_v45 = vadd.f32 %v1253_v42, %v1079_v41  ;;  %v1295_v7 = vadd.f32 %v1294_v43, %v1087_v2 }
 0x24a   :  { %v1255_v50 = vpop.f32.mrf.mxu1  ;;  %v1971_v51 = vpop.f32.mrf.mxu0 }
 0x24b   :  { %v1300_v53 = vadd.f32 %v1254_v45, %v1028_v44  ;;  %v1256_v58 = vadd.f32 %v1255_v50, %v1083_v47 }
 0x24c   :  { %v1257_v55 = vpop.f32.mrf.mxu1  ;;  %v1297_v56 = vpop.f32.mrf.mxu0 }
 0x24d   :  { %v1830_v57 = vmul.f32 -1.442695, %v1300_v53  ;;  %v1307_v63 = vadd.f32 %v1256_v58, %v1030_v62 }
 0x24e   :  { %v1258_v60 = vpop.f32.mrf.mxu1  ;;  %v1972_v61 = vpop.f32.mrf.mxu0 }
 0x24f   :  { %2205 = vpow2.f32 %v1830_v57  ;;  %v1831_v0 = vmul.f32 -1.442695, %v1307_v63 }
 0x251   :  { %2207 = vpow2.f32 %v1831_v0 }
 0x25c   :  { %v2206_v1 = vpop.eup %2205 }
 0x25d   :  { %v1304_v8 = vadd.f32 1.0, %v2206_v1 }
 0x25e   :  { %v2208_v3 = vpop.eup %2207 }
 0x25f   :  { %2209 = vrcp.f32 %v1304_v8  ;;  %v1311_v6 = vadd.f32 1.0, %v2208_v3 }
 0x261   :  { %2211 = vrcp.f32 %v1311_v6 }
 0x26c   :  { %v2210_v9 = vpop.eup %2209 }
 0x26d   :  { %v1314_v10 = vmul.f32 %v2210_v9, %v1295_v7 }
 0x26e   :  { %v2212_v12 = vpop.eup %2211 }
 0x26f   :  { %v1315_v11 = vadd.f32 %v1314_v10, %v1069_v46  ;;  %v1317_v14 = vsub.f32 1.0, %v2212_v12  ;;  %v1319_v16 = vmul.f32 %v2212_v12, %v2469_v59  ;;  %v1367_v59 = vrot.slane %v1358_v22, %v2450_v54 }
 0x271   :  { %2213 = vtanh.f32 %v1315_v11 }
 0x27e   :  { %v2214_v15 = vpop.eup %2213 }
 0x27f   :  { %v1318_v17 = vmul.f32 %v2214_v15, %v1317_v14 }
 0x281   :  { %v1320_v18 = vadd.f32 %v1319_v16, %v1318_v17 }
 0x283   :  { %v1323_v19 = vpack.c.bf16 %v1320_v18, %v1320_v18  ;;  %1322 = vst [vmem:[#allocation11 + $0x8] sm:$0xff] %v1320_v18 }
 0x285   :  { %1324 = vst [vmem:[#allocation2] sm:$0xf] %v1323_v19 }
 0x28c   :  { %v1325_v20 = vld [vmem:[#allocation2] sm:$0xf] }
 0x28d   :  { %1573 = vmatmul.mubr.bf16.vlgmr.msra.gmra.mxu1 %v1325_v20  ;;  %1614 = vmatmul.mubr.bf16.vlgmr.msra.gmra.mxu0 %v1325_v20 }
 0x34d   :  { %v1574_v26 = vpop.f32.mrf.mxu1  ;;  %v1615_v27 = vpop.f32.mrf.mxu0 }
 0x34e   :  { %v1575_v30 = vadd.f32 %v1574_v26, %v1363_v23  ;;  %v1616_v31 = vadd.f32 %v1615_v27, %v1371_v24 }
 0x34f   :  { %v1576_v28 = vpop.f32.mrf.mxu1  ;;  %v1617_v29 = vpop.f32.mrf.mxu0 }
 0x350   :  { %v1577_v32 = vadd.f32 %v1576_v28, %v1367_v59  ;;  %v1618_v33 = vadd.f32 %v1617_v29, %v1375_v25 }
 0x351   :  { %v1578_v48 = vpop.f32.mrf.mxu1  ;;  %v1619_v34 = vpop.f32.mrf.mxu0 }
 0x352   :  { %v1638_v35 = vmax.f32 %v1575_v30, %v1577_v32  ;;  %v1639_v36 = vmax.f32 %v1616_v31, %v1618_v33 }
 0x353   :  { %v1579_v37 = vpop.f32.mrf.mxu1  ;;  %v1620_v38 = vpop.f32.mrf.mxu0 }
 0x354   :  { %v1640_v49 = vmax.f32 %v1638_v35, %v1639_v36 }
 0x356   :  { %1641 = vmax.xlane.f32.xlu0 %v1640_v49 }
 0x3df   :  { %v1642_v13 = vpop.xlane.xlu0 %1641 }
 0x3e0   :  { %v1643_v39 = vsub.f32 %v1575_v30, %v1642_v13  ;;  %v1644_v54 = vsub.f32 %v1577_v32, %v1642_v13  ;;  %v1645_v5 = vsub.f32 %v1616_v31, %v1642_v13  ;;  %v1646_v40 = vsub.f32 %v1618_v33, %v1642_v13 }
 0x3e2   :  { %v1647_v41 = vmul.f32 1.442695, %v1643_v39  ;;  %v1649_v42 = vmul.f32 1.442695, %v1644_v54  ;;  %v1651_v43 = vmul.f32 1.442695, %v1645_v5 }
 0x3e3   :  { %v1653_v44 = vmul.f32 1.442695, %v1646_v40 }
 0x3e4   :  { %2215 = vpow2.f32 %v1647_v41 }
 0x3e5   :  { %2217 = vpow2.f32 %v1649_v42 }
 0x3e6   :  { %2219 = vpow2.f32 %v1651_v43 }
 0x3e7   :  { %2221 = vpow2.f32 %v1653_v44 }
 0x3f1   :  { %v2216_v45 = vpop.eup %2215 }
 0x3f2   :  { %v2218_v47 = vpop.eup %2217 }
 0x3f3   :  { %v1655_v50 = vadd.f32 %v2218_v47, %v2216_v45  ;;  %v2220_v51 = vpop.eup %2219 }
 0x3f4   :  { %v2222_v53 = vpop.eup %2221 }
 0x3f5   :  { %v1656_v52 = vadd.f32 %v2220_v51, %v1655_v50 }
 0x3f7   :  { %v1657_v55 = vadd.f32 %v2222_v53, %v1656_v52 }
 0x3f9   :  { %1658 = vadd.xlane.f32.xlu0 %v1657_v55 }
 0x3fa   :  { %2296 = shalt.err (!%p2293_p5)
}
 0x3fb   :  { %1692 = dma.vmem_to_hbm [thread:$0]  %s1687_s8, 256, %s2512_s7, [#allocation12], %s2337_s11, %s2337_s11, %s2338_s12  }
 0x3fc   :  { %s2346_s14 = smov [#allocation10]  }
 0x3fd   :  { %s1677_s2 = sshll.u32 %s2346_s14, 4  ;;  %s1678_s2 = int_to_ptr.vmem [resolvable:$true] %s1677_s2 }
 0x3fe   :  { %s2305_s15 = scalar_lea.vmem %s1678_s2, 512  ;;  %p2310_p7 = scmp.lt.s32.totalorder %s1678_s2, %s1678_s2 }
 0x3ff   :  { %p2306_p6 = scmp.ne.s32.totalorder %s1678_s2, %s2305_s15  ;;  %p2311_p8 = scmp.lt.s32.totalorder %s2305_s15, %s2305_s15 }
 0x401   :  { %p2312_p9 = por %p2311_p8, %p2310_p7 }
 0x403   :  { %p2313_p10 = pnand %p2312_p9, %p2306_p6 }
 0x482   :  { %v1659_v56 = vpop.xlane.xlu0 %1658 }
 0x483   :  { %2223 = vlog2.f32 %v1659_v56 }
 0x490   :  { %v2224_v57 = vpop.eup %2223 }
 0x491   :  { %v1661_v58 = vmul.f32 0.6931472, %v2224_v57 }
 0x493   :  { %v1662_v60 = vadd.f32 %v1661_v58, %v1642_v13 }
 0x495   :  { %v1663_v61 = vsub.f32 %v1575_v30, %v1662_v60  ;;  %v1664_v62 = vsub.f32 %v1577_v32, %v1662_v60  ;;  %v1665_v63 = vsub.f32 %v1616_v31, %v1662_v60  ;;  %v1666_v0 = vsub.f32 %v1618_v33, %v1662_v60 }
 0x497   :  { %1667 = vst [vmem:[#allocation10] sm:$0xff] %v1663_v61  ;;  %1668 = vst [vmem:[#allocation10 + $0x8] sm:$0xff] %v1664_v62 }
 0x498   :  { %1669 = vst [vmem:[#allocation10 + $0x10] sm:$0xff] %v1665_v63  ;;  %1670 = vst [vmem:[#allocation10 + $0x18] sm:$0xff] %v1666_v0 }
 0x499   :  { %2316 = shalt.err (!%p2313_p10)
}
 0x49a   :  { %1680 = dma.vmem_to_hbm [thread:$0]  %s1678_s2, 512, %s2511_s6, [#allocation6]  }
 0x49b   :  { %2329 = dma.done.wait [#allocation6], 512  }
 0x49c   :  { %2330 = vsyncadd [#allocation6], 4294966784 }
 0x49d   :  { %2331 = dma.done.wait [#allocation12], 256  }
 0x49e   :  { %2332 = vsyncadd [#allocation12], 4294967040 }
 0x49f   :  { %1699 = vsyncpa [#allocation5], 1 }
 0x4a0   :  { %1700 = vsyncpa [#allocation8], 1 }
 0x4a1   :  { %1701 = vsyncpa [#allocation6], 1 }
 0x4a2   :  { %1702 = vsyncpa [#allocation12], 1 }

</bundles_post_ra>
